<compile_context>
chip_gen: v5e
topology: v5e:2x2
jax: 0.10.0
libtpu: 0.0.40
codegen_flags: <defaults>
</compile_context>

<pallas_src>
import functools

import jax
import jax.numpy as jnp
from jax.experimental import pallas as pl
from jax.experimental.pallas import tpu as pltpu

_LANE = 128  # cameras per grid block (camera axis lives on the 128-lane dim)


def _rodrigues_rows(r_ref, t_ref):
    """Per-lane (per-camera) Rodrigues rotation + translation entries.

    Returns the three leading rows of the homogeneous c2w matrix, each row a
    4-tuple of (1, LANE) float32 arrays; the last row is the constant
    [0, 0, 0, 1] and is handled by the callers.
    """
    rx = r_ref[0:1, :]
    ry = r_ref[1:2, :]
    rz = r_ref[2:3, :]
    tx = t_ref[0:1, :]
    ty = t_ref[1:2, :]
    tz = t_ref[2:3, :]

    # Rodrigues: R = I + sin(n)/n * S + (1-cos(n))/n^2 * S^2,
    # with S = skew(r) and the exact identity S^2 = r r^T - |r|^2 I.
    n2 = rx * rx + ry * ry + rz * rz
    n = jnp.sqrt(n2) + 1e-15              # same eps as the PyTorch module
    a = jnp.sin(n) / n
    b = (1.0 - jnp.cos(n)) / (n * n)

    r00 = 1.0 + b * (rx * rx - n2)
    r01 = -a * rz + b * (rx * ry)
    r02 = a * ry + b * (rx * rz)
    r10 = a * rz + b * (ry * rx)
    r11 = 1.0 + b * (ry * ry - n2)
    r12 = -a * rx + b * (ry * rz)
    r20 = -a * ry + b * (rz * rx)
    r21 = a * rx + b * (rz * ry)
    r22 = 1.0 + b * (rz * rz - n2)

    return ((r00, r01, r02, tx),
            (r10, r11, r12, ty),
            (r20, r21, r22, tz))


def _pose_kernel(r_ref, t_ref, out_ref):
    """transform_only path: out = c2w(r, t), flattened row-major into 16 rows."""
    rows = _rodrigues_rows(r_ref, t_ref)
    zero = jnp.zeros_like(rows[0][0])
    one = zero + 1.0
    flat = rows[0] + rows[1] + rows[2] + (zero, zero, zero, one)
    for k, v in enumerate(flat):
        out_ref[k:k + 1, :] = v


def _pose_compose_kernel(r_ref, t_ref, init_ref, out_ref):
    """Full path: out = c2w(r, t) @ init_c2w, flattened row-major into 16 rows."""
    rows = _rodrigues_rows(r_ref, t_ref)

    def init_at(k, j):
        return init_ref[4 * k + j: 4 * k + j + 1, :]

    # 4x4 compose as per-lane scalar arithmetic (VPU); MXU would only add
    # latency at this tile size.
    for i in range(3):
        c0, c1, c2, ti = rows[i]
        for j in range(4):
            out_ref[4 * i + j: 4 * i + j + 1, :] = (
                c0 * init_at(0, j) + c1 * init_at(1, j)
                + c2 * init_at(2, j) + ti * init_at(3, j))
    # Last row of c2w is [0, 0, 0, 1] -> copies init's last row through.
    for j in range(4):
        out_ref[12 + j: 13 + j, :] = init_at(3, j)


def _run_batched(r_sel, t_sel, init_sel):
    """r_sel/t_sel: (B, 3) f32; init_sel: (B, 4, 4) f32 or None -> (B, 4, 4)."""
    B = r_sel.shape[0]
    Bp = ((B + _LANE - 1) // _LANE) * _LANE
    pad = Bp - B

    rT = jnp.pad(r_sel.astype(jnp.float32), ((0, pad), (0, 0))).T      # (3, Bp)
    tT = jnp.pad(t_sel.astype(jnp.float32), ((0, pad), (0, 0))).T      # (3, Bp)

    grid = (Bp // _LANE,)
    vec_spec = pl.BlockSpec((3, _LANE), lambda i: (0, i))
    mat_spec = pl.BlockSpec((16, _LANE), lambda i: (0, i))
    params = pltpu.CompilerParams(dimension_semantics=("parallel",))
    out_shape = jax.ShapeDtypeStruct((16, Bp), jnp.float32)

    if init_sel is None:
        out_flat = pl.pallas_call(
            _pose_kernel,
            out_shape=out_shape,
            grid_spec=pltpu.PrefetchScalarGridSpec(
                num_scalar_prefetch=0, grid=grid,
                in_specs=[vec_spec, vec_spec],
                out_specs=mat_spec),
            compiler_params=params,
        )(rT, tT)
    else:
        initT = jnp.pad(init_sel.astype(jnp.float32).reshape(B, 16),
                        ((0, pad), (0, 0))).T                          # (16, Bp)
        out_flat = pl.pallas_call(
            _pose_compose_kernel,
            out_shape=out_shape,
            grid_spec=pltpu.PrefetchScalarGridSpec(
                num_scalar_prefetch=0, grid=grid,
                in_specs=[vec_spec, vec_spec, mat_spec],
                out_specs=mat_spec),
            compiler_params=params,
        )(rT, tT, initT)

    # Lane-dense (16, Bp) slab -> (B, 4, 4); layout plumbing stays in XLA.
    return out_flat.T[:B].reshape(B, 4, 4)


@functools.partial(jax.jit, static_argnames=("transform_only",))
def learn_pose_forward(cam_id, r, t, init_c2w=None, transform_only=False):
    """LearnPose.forward. cam_id may be a scalar or an int vector (batched)."""
    scalar = jnp.ndim(cam_id) == 0
    cam_ids = jnp.atleast_1d(jnp.asarray(cam_id, jnp.int32))
    r_sel = jnp.take(r, cam_ids, axis=0)
    t_sel = jnp.take(t, cam_ids, axis=0)
    init_sel = None
    if (not transform_only) and (init_c2w is not None):
        init_sel = jnp.take(init_c2w, cam_ids, axis=0)
    out = _run_batched(r_sel, t_sel, init_sel)
    return out[0] if scalar else out


@functools.partial(jax.jit, static_argnames=("transform_only",))
def learn_pose_forward_all(r, t, init_c2w=None, transform_only=False):
    """All-camera forward: returns (num_cams, 4, 4) poses in one kernel call."""
    init_sel = None if (transform_only or init_c2w is None) else init_c2w
    return _run_batched(r, t, init_sel)


def _ref_forward_single(cam_id, r, t, init_c2w, transform_only=False):
    """Pure-JAX reference mirroring the PyTorch make_c2w / forward."""
    rv = r[cam_id]
    tv = t[cam_id]
    skew = jnp.array([[0.0, -rv[2], rv[1]],
                      [rv[2], 0.0, -rv[0]],
                      [-rv[1], rv[0], 0.0]], jnp.float32)
    n = jnp.linalg.norm(rv) + 1e-15
    rot = (jnp.eye(3, dtype=jnp.float32)
           + (jnp.sin(n) / n) * skew
           + ((1.0 - jnp.cos(n)) / (n * n)) * (skew @ skew))
    c2w = jnp.concatenate([rot, tv[:, None]], axis=1)
    c2w = jnp.concatenate(
        [c2w, jnp.array([[0.0, 0.0, 0.0, 1.0]], jnp.float32)], axis=0)
    if transform_only:
        return c2w
    return c2w @ init_c2w[cam_id]


if __name__ == "__main__":
    num_cams = 8
    key = jax.random.PRNGKey(0)
    k1, k2, k3 = jax.random.split(key, 3)

    # Module __init__ uses zeros for r, t; use small deterministic randoms so
    # the Rodrigues exp-map path is actually exercised.
    r = 0.2 * jax.random.normal(k1, (num_cams, 3), jnp.float32)
    t = jax.random.normal(k2, (num_cams, 3), jnp.float32)
    init_c2w = (jnp.eye(4, dtype=jnp.float32)[None, :, :]
                + 0.1 * jax.random.normal(k3, (num_cams, 4, 4), jnp.float32))

    ref_all = jnp.stack([_ref_forward_single(i, r, t, init_c2w)
                         for i in range(num_cams)])

    # Batched forward over all cameras (the main optimized path).
    out_all = jax.block_until_ready(learn_pose_forward_all(r, t, init_c2w))
    assert out_all.shape == (num_cams, 4, 4) and out_all.dtype == jnp.float32
    assert jnp.allclose(out_all, ref_all, atol=1e-5, rtol=1e-5), (out_all, ref_all)

    # Module-equivalent single-camera forward.
    cam_id = 3
    out_one = jax.block_until_ready(learn_pose_forward(cam_id, r, t, init_c2w))
    assert out_one.shape == (4, 4)
    assert jnp.allclose(out_one, ref_all[cam_id], atol=1e-5, rtol=1e-5)

    # Vector of cam_ids (gather + one batched kernel call).
    cam_ids = jnp.array([0, 3, 5, 7, 2], jnp.int32)
    out_vec = jax.block_until_ready(learn_pose_forward(cam_ids, r, t, init_c2w))
    assert jnp.allclose(out_vec, ref_all[cam_ids], atol=1e-5, rtol=1e-5)

    # transform_only branch: specialized kernel, no init compose / no identity DMA.
    out_to = jax.block_until_ready(
        learn_pose_forward(cam_id, r, t, init_c2w, transform_only=True))
    ref_to = _ref_forward_single(cam_id, r, t, init_c2w, transform_only=True)
    assert jnp.allclose(out_to, ref_to, atol=1e-5, rtol=1e-5)

    print("KERNEL_OK")
</pallas_src>

<mosaic_0001>
module attributes {stable_mosaic.version = 11 : i64} {
  func.func @_pose_compose_kernel(%arg0: i32, %arg1: memref<3x128xf32, #tpu.memory_space<vmem>>, %arg2: memref<3x128xf32, #tpu.memory_space<vmem>>, %arg3: memref<16x128xf32, #tpu.memory_space<vmem>>, %arg4: memref<16x128xf32, #tpu.memory_space<vmem>>) attributes {dimension_semantics = [#tpu.dimension_semantics<parallel>], iteration_bounds = array<i64: 1>, scalar_prefetch = 0 : i64, scratch_operands = 0 : i64, tpu.core_type = #tpu.core_type<tc>, window_params = [{transform_indices = @transform_0, window_bounds = array<i64: 3, 128>}, {transform_indices = @transform_1, window_bounds = array<i64: 3, 128>}, {transform_indices = @transform_2, window_bounds = array<i64: 16, 128>}, {transform_indices = @transform_3, window_bounds = array<i64: 16, 128>}]} {
    %c0 = arith.constant 0 : index
    %c0_0 = arith.constant 0 : index
    %0 = vector.load %arg1[%c0, %c0_0] : memref<3x128xf32, #tpu.memory_space<vmem>>, vector<1x128xf32>
    %c1 = arith.constant 1 : index
    %c0_1 = arith.constant 0 : index
    %1 = vector.load %arg1[%c1, %c0_1] : memref<3x128xf32, #tpu.memory_space<vmem>>, vector<1x128xf32>
    %c2 = arith.constant 2 : index
    %c0_2 = arith.constant 0 : index
    %2 = vector.load %arg1[%c2, %c0_2] : memref<3x128xf32, #tpu.memory_space<vmem>>, vector<1x128xf32>
    %c0_3 = arith.constant 0 : index
    %c0_4 = arith.constant 0 : index
    %3 = vector.load %arg2[%c0_3, %c0_4] : memref<3x128xf32, #tpu.memory_space<vmem>>, vector<1x128xf32>
    %c1_5 = arith.constant 1 : index
    %c0_6 = arith.constant 0 : index
    %4 = vector.load %arg2[%c1_5, %c0_6] : memref<3x128xf32, #tpu.memory_space<vmem>>, vector<1x128xf32>
    %c2_7 = arith.constant 2 : index
    %c0_8 = arith.constant 0 : index
    %5 = vector.load %arg2[%c2_7, %c0_8] : memref<3x128xf32, #tpu.memory_space<vmem>>, vector<1x128xf32>
    %6 = arith.mulf %0, %0 : vector<1x128xf32>
    %7 = arith.mulf %1, %1 : vector<1x128xf32>
    %8 = arith.addf %6, %7 : vector<1x128xf32>
    %9 = arith.mulf %2, %2 : vector<1x128xf32>
    %10 = arith.addf %8, %9 : vector<1x128xf32>
    %11 = math.sqrt %10 : vector<1x128xf32>
    %cst = arith.constant 1.000000e-15 : f32
    %12 = vector.broadcast %cst : f32 to vector<1x128xf32>
    %13 = arith.addf %11, %12 : vector<1x128xf32>
    %14 = math.sin %13 : vector<1x128xf32>
    %15 = arith.divf %14, %13 : vector<1x128xf32>
    %16 = math.cos %13 : vector<1x128xf32>
    %cst_9 = arith.constant 1.000000e+00 : f32
    %17 = vector.broadcast %cst_9 : f32 to vector<1x128xf32>
    %18 = arith.subf %17, %16 : vector<1x128xf32>
    %19 = arith.mulf %13, %13 : vector<1x128xf32>
    %20 = arith.divf %18, %19 : vector<1x128xf32>
    %21 = arith.mulf %0, %0 : vector<1x128xf32>
    %22 = arith.subf %21, %10 : vector<1x128xf32>
    %23 = arith.mulf %20, %22 : vector<1x128xf32>
    %cst_10 = arith.constant 1.000000e+00 : f32
    %24 = vector.broadcast %cst_10 : f32 to vector<1x128xf32>
    %25 = arith.addf %24, %23 : vector<1x128xf32>
    %cst_11 = arith.constant 0.000000e+00 : f32
    %26 = vector.broadcast %cst_11 : f32 to vector<1x128xf32>
    %27 = arith.subf %26, %15 : vector<1x128xf32>
    %28 = arith.mulf %27, %2 : vector<1x128xf32>
    %29 = arith.mulf %0, %1 : vector<1x128xf32>
    %30 = arith.mulf %20, %29 : vector<1x128xf32>
    %31 = arith.addf %28, %30 : vector<1x128xf32>
    %32 = arith.mulf %15, %1 : vector<1x128xf32>
    %33 = arith.mulf %0, %2 : vector<1x128xf32>
    %34 = arith.mulf %20, %33 : vector<1x128xf32>
    %35 = arith.addf %32, %34 : vector<1x128xf32>
    %36 = arith.mulf %15, %2 : vector<1x128xf32>
    %37 = arith.mulf %1, %0 : vector<1x128xf32>
    %38 = arith.mulf %20, %37 : vector<1x128xf32>
    %39 = arith.addf %36, %38 : vector<1x128xf32>
    %40 = arith.mulf %1, %1 : vector<1x128xf32>
    %41 = arith.subf %40, %10 : vector<1x128xf32>
    %42 = arith.mulf %20, %41 : vector<1x128xf32>
    %cst_12 = arith.constant 1.000000e+00 : f32
    %43 = vector.broadcast %cst_12 : f32 to vector<1x128xf32>
    %44 = arith.addf %43, %42 : vector<1x128xf32>
    %cst_13 = arith.constant 0.000000e+00 : f32
    %45 = vector.broadcast %cst_13 : f32 to vector<1x128xf32>
    %46 = arith.subf %45, %15 : vector<1x128xf32>
    %47 = arith.mulf %46, %0 : vector<1x128xf32>
    %48 = arith.mulf %1, %2 : vector<1x128xf32>
    %49 = arith.mulf %20, %48 : vector<1x128xf32>
    %50 = arith.addf %47, %49 : vector<1x128xf32>
    %cst_14 = arith.constant 0.000000e+00 : f32
    %51 = vector.broadcast %cst_14 : f32 to vector<1x128xf32>
    %52 = arith.subf %51, %15 : vector<1x128xf32>
    %53 = arith.mulf %52, %1 : vector<1x128xf32>
    %54 = arith.mulf %2, %0 : vector<1x128xf32>
    %55 = arith.mulf %20, %54 : vector<1x128xf32>
    %56 = arith.addf %53, %55 : vector<1x128xf32>
    %57 = arith.mulf %15, %0 : vector<1x128xf32>
    %58 = arith.mulf %2, %1 : vector<1x128xf32>
    %59 = arith.mulf %20, %58 : vector<1x128xf32>
    %60 = arith.addf %57, %59 : vector<1x128xf32>
    %61 = arith.mulf %2, %2 : vector<1x128xf32>
    %62 = arith.subf %61, %10 : vector<1x128xf32>
    %63 = arith.mulf %20, %62 : vector<1x128xf32>
    %cst_15 = arith.constant 1.000000e+00 : f32
    %64 = vector.broadcast %cst_15 : f32 to vector<1x128xf32>
    %65 = arith.addf %64, %63 : vector<1x128xf32>
    %c0_16 = arith.constant 0 : index
    %c0_17 = arith.constant 0 : index
    %66 = vector.load %arg3[%c0_16, %c0_17] : memref<16x128xf32, #tpu.memory_space<vmem>>, vector<1x128xf32>
    %67 = arith.mulf %25, %66 : vector<1x128xf32>
    %c4 = arith.constant 4 : index
    %c0_18 = arith.constant 0 : index
    %68 = vector.load %arg3[%c4, %c0_18] : memref<16x128xf32, #tpu.memory_space<vmem>>, vector<1x128xf32>
    %69 = arith.mulf %31, %68 : vector<1x128xf32>
    %70 = arith.addf %67, %69 : vector<1x128xf32>
    %c8 = arith.constant 8 : index
    %c0_19 = arith.constant 0 : index
    %71 = vector.load %arg3[%c8, %c0_19] : memref<16x128xf32, #tpu.memory_space<vmem>>, vector<1x128xf32>
    %72 = arith.mulf %35, %71 : vector<1x128xf32>
    %73 = arith.addf %70, %72 : vector<1x128xf32>
    %c12 = arith.constant 12 : index
    %c0_20 = arith.constant 0 : index
    %74 = vector.load %arg3[%c12, %c0_20] : memref<16x128xf32, #tpu.memory_space<vmem>>, vector<1x128xf32>
    %75 = arith.mulf %3, %74 : vector<1x128xf32>
    %76 = arith.addf %73, %75 : vector<1x128xf32>
    %c0_21 = arith.constant 0 : index
    %c0_22 = arith.constant 0 : index
    %77 = vector.load %arg4[%c0_21, %c0_22] : memref<16x128xf32, #tpu.memory_space<vmem>>, vector<1x128xf32>
    tpu.vector_store %arg4[%c0_21, %c0_22], %76 {strides = array<i32>} : memref<16x128xf32, #tpu.memory_space<vmem>>, vector<1x128xf32>,
    %c1_23 = arith.constant 1 : index
    %c0_24 = arith.constant 0 : index
    %78 = vector.load %arg3[%c1_23, %c0_24] : memref<16x128xf32, #tpu.memory_space<vmem>>, vector<1x128xf32>
    %79 = arith.mulf %25, %78 : vector<1x128xf32>
    %c5 = arith.constant 5 : index
    %c0_25 = arith.constant 0 : index
    %80 = vector.load %arg3[%c5, %c0_25] : memref<16x128xf32, #tpu.memory_space<vmem>>, vector<1x128xf32>
    %81 = arith.mulf %31, %80 : vector<1x128xf32>
    %82 = arith.addf %79, %81 : vector<1x128xf32>
    %c9 = arith.constant 9 : index
    %c0_26 = arith.constant 0 : index
    %83 = vector.load %arg3[%c9, %c0_26] : memref<16x128xf32, #tpu.memory_space<vmem>>, vector<1x128xf32>
    %84 = arith.mulf %35, %83 : vector<1x128xf32>
    %85 = arith.addf %82, %84 : vector<1x128xf32>
    %c13 = arith.constant 13 : index
    %c0_27 = arith.constant 0 : index
    %86 = vector.load %arg3[%c13, %c0_27] : memref<16x128xf32, #tpu.memory_space<vmem>>, vector<1x128xf32>
    %87 = arith.mulf %3, %86 : vector<1x128xf32>
    %88 = arith.addf %85, %87 : vector<1x128xf32>
    %c1_28 = arith.constant 1 : index
    %c0_29 = arith.constant 0 : index
    %89 = vector.load %arg4[%c1_28, %c0_29] : memref<16x128xf32, #tpu.memory_space<vmem>>, vector<1x128xf32>
    tpu.vector_store %arg4[%c1_28, %c0_29], %88 {strides = array<i32>} : memref<16x128xf32, #tpu.memory_space<vmem>>, vector<1x128xf32>,
    %c2_30 = arith.constant 2 : index
    %c0_31 = arith.constant 0 : index
    %90 = vector.load %arg3[%c2_30, %c0_31] : memref<16x128xf32, #tpu.memory_space<vmem>>, vector<1x128xf32>
    %91 = arith.mulf %25, %90 : vector<1x128xf32>
    %c6 = arith.constant 6 : index
    %c0_32 = arith.constant 0 : index
    %92 = vector.load %arg3[%c6, %c0_32] : memref<16x128xf32, #tpu.memory_space<vmem>>, vector<1x128xf32>
    %93 = arith.mulf %31, %92 : vector<1x128xf32>
    %94 = arith.addf %91, %93 : vector<1x128xf32>
    %c10 = arith.constant 10 : index
    %c0_33 = arith.constant 0 : index
    %95 = vector.load %arg3[%c10, %c0_33] : memref<16x128xf32, #tpu.memory_space<vmem>>, vector<1x128xf32>
    %96 = arith.mulf %35, %95 : vector<1x128xf32>
    %97 = arith.addf %94, %96 : vector<1x128xf32>
    %c14 = arith.constant 14 : index
    %c0_34 = arith.constant 0 : index
    %98 = vector.load %arg3[%c14, %c0_34] : memref<16x128xf32, #tpu.memory_space<vmem>>, vector<1x128xf32>
    %99 = arith.mulf %3, %98 : vector<1x128xf32>
    %100 = arith.addf %97, %99 : vector<1x128xf32>
    %c2_35 = arith.constant 2 : index
    %c0_36 = arith.constant 0 : index
    %101 = vector.load %arg4[%c2_35, %c0_36] : memref<16x128xf32, #tpu.memory_space<vmem>>, vector<1x128xf32>
    tpu.vector_store %arg4[%c2_35, %c0_36], %100 {strides = array<i32>} : memref<16x128xf32, #tpu.memory_space<vmem>>, vector<1x128xf32>,
    %c3 = arith.constant 3 : index
    %c0_37 = arith.constant 0 : index
    %102 = vector.load %arg3[%c3, %c0_37] : memref<16x128xf32, #tpu.memory_space<vmem>>, vector<1x128xf32>
    %103 = arith.mulf %25, %102 : vector<1x128xf32>
    %c7 = arith.constant 7 : index
    %c0_38 = arith.constant 0 : index
    %104 = vector.load %arg3[%c7, %c0_38] : memref<16x128xf32, #tpu.memory_space<vmem>>, vector<1x128xf32>
    %105 = arith.mulf %31, %104 : vector<1x128xf32>
    %106 = arith.addf %103, %105 : vector<1x128xf32>
    %c11 = arith.constant 11 : index
    %c0_39 = arith.constant 0 : index
    %107 = vector.load %arg3[%c11, %c0_39] : memref<16x128xf32, #tpu.memory_space<vmem>>, vector<1x128xf32>
    %108 = arith.mulf %35, %107 : vector<1x128xf32>
    %109 = arith.addf %106, %108 : vector<1x128xf32>
    %c15 = arith.constant 15 : index
    %c0_40 = arith.constant 0 : index
    %110 = vector.load %arg3[%c15, %c0_40] : memref<16x128xf32, #tpu.memory_space<vmem>>, vector<1x128xf32>
    %111 = arith.mulf %3, %110 : vector<1x128xf32>
    %112 = arith.addf %109, %111 : vector<1x128xf32>
    %c3_41 = arith.constant 3 : index
    %c0_42 = arith.constant 0 : index
    %113 = vector.load %arg4[%c3_41, %c0_42] : memref<16x128xf32, #tpu.memory_space<vmem>>, vector<1x128xf32>
    tpu.vector_store %arg4[%c3_41, %c0_42], %112 {strides = array<i32>} : memref<16x128xf32, #tpu.memory_space<vmem>>, vector<1x128xf32>,
    %c0_43 = arith.constant 0 : index
    %c0_44 = arith.constant 0 : index
    %114 = vector.load %arg3[%c0_43, %c0_44] : memref<16x128xf32, #tpu.memory_space<vmem>>, vector<1x128xf32>
    %115 = arith.mulf %39, %114 : vector<1x128xf32>
    %c4_45 = arith.constant 4 : index
    %c0_46 = arith.constant 0 : index
    %116 = vector.load %arg3[%c4_45, %c0_46] : memref<16x128xf32, #tpu.memory_space<vmem>>, vector<1x128xf32>
    %117 = arith.mulf %44, %116 : vector<1x128xf32>
    %118 = arith.addf %115, %117 : vector<1x128xf32>
    %c8_47 = arith.constant 8 : index
    %c0_48 = arith.constant 0 : index
    %119 = vector.load %arg3[%c8_47, %c0_48] : memref<16x128xf32, #tpu.memory_space<vmem>>, vector<1x128xf32>
    %120 = arith.mulf %50, %119 : vector<1x128xf32>
    %121 = arith.addf %118, %120 : vector<1x128xf32>
    %c12_49 = arith.constant 12 : index
    %c0_50 = arith.constant 0 : index
    %122 = vector.load %arg3[%c12_49, %c0_50] : memref<16x128xf32, #tpu.memory_space<vmem>>, vector<1x128xf32>
    %123 = arith.mulf %4, %122 : vector<1x128xf32>
    %124 = arith.addf %121, %123 : vector<1x128xf32>
    %c4_51 = arith.constant 4 : index
    %c0_52 = arith.constant 0 : index
    %125 = vector.load %arg4[%c4_51, %c0_52] : memref<16x128xf32, #tpu.memory_space<vmem>>, vector<1x128xf32>
    tpu.vector_store %arg4[%c4_51, %c0_52], %124 {strides = array<i32>} : memref<16x128xf32, #tpu.memory_space<vmem>>, vector<1x128xf32>,
    %c1_53 = arith.constant 1 : index
    %c0_54 = arith.constant 0 : index
    %126 = vector.load %arg3[%c1_53, %c0_54] : memref<16x128xf32, #tpu.memory_space<vmem>>, vector<1x128xf32>
    %127 = arith.mulf %39, %126 : vector<1x128xf32>
    %c5_55 = arith.constant 5 : index
    %c0_56 = arith.constant 0 : index
    %128 = vector.load %arg3[%c5_55, %c0_56] : memref<16x128xf32, #tpu.memory_space<vmem>>, vector<1x128xf32>
    %129 = arith.mulf %44, %128 : vector<1x128xf32>
    %130 = arith.addf %127, %129 : vector<1x128xf32>
    %c9_57 = arith.constant 9 : index
    %c0_58 = arith.constant 0 : index
    %131 = vector.load %arg3[%c9_57, %c0_58] : memref<16x128xf32, #tpu.memory_space<vmem>>, vector<1x128xf32>
    %132 = arith.mulf %50, %131 : vector<1x128xf32>
    %133 = arith.addf %130, %132 : vector<1x128xf32>
    %c13_59 = arith.constant 13 : index
    %c0_60 = arith.constant 0 : index
    %134 = vector.load %arg3[%c13_59, %c0_60] : memref<16x128xf32, #tpu.memory_space<vmem>>, vector<1x128xf32>
    %135 = arith.mulf %4, %134 : vector<1x128xf32>
    %136 = arith.addf %133, %135 : vector<1x128xf32>
    %c5_61 = arith.constant 5 : index
    %c0_62 = arith.constant 0 : index
    %137 = vector.load %arg4[%c5_61, %c0_62] : memref<16x128xf32, #tpu.memory_space<vmem>>, vector<1x128xf32>
    tpu.vector_store %arg4[%c5_61, %c0_62], %136 {strides = array<i32>} : memref<16x128xf32, #tpu.memory_space<vmem>>, vector<1x128xf32>,
    %c2_63 = arith.constant 2 : index
    %c0_64 = arith.constant 0 : index
    %138 = vector.load %arg3[%c2_63, %c0_64] : memref<16x128xf32, #tpu.memory_space<vmem>>, vector<1x128xf32>
    %139 = arith.mulf %39, %138 : vector<1x128xf32>
    %c6_65 = arith.constant 6 : index
    %c0_66 = arith.constant 0 : index
    %140 = vector.load %arg3[%c6_65, %c0_66] : memref<16x128xf32, #tpu.memory_space<vmem>>, vector<1x128xf32>
    %141 = arith.mulf %44, %140 : vector<1x128xf32>
    %142 = arith.addf %139, %141 : vector<1x128xf32>
    %c10_67 = arith.constant 10 : index
    %c0_68 = arith.constant 0 : index
    %143 = vector.load %arg3[%c10_67, %c0_68] : memref<16x128xf32, #tpu.memory_space<vmem>>, vector<1x128xf32>
    %144 = arith.mulf %50, %143 : vector<1x128xf32>
    %145 = arith.addf %142, %144 : vector<1x128xf32>
    %c14_69 = arith.constant 14 : index
    %c0_70 = arith.constant 0 : index
    %146 = vector.load %arg3[%c14_69, %c0_70] : memref<16x128xf32, #tpu.memory_space<vmem>>, vector<1x128xf32>
    %147 = arith.mulf %4, %146 : vector<1x128xf32>
    %148 = arith.addf %145, %147 : vector<1x128xf32>
    %c6_71 = arith.constant 6 : index
    %c0_72 = arith.constant 0 : index
    %149 = vector.load %arg4[%c6_71, %c0_72] : memref<16x128xf32, #tpu.memory_space<vmem>>, vector<1x128xf32>
    tpu.vector_store %arg4[%c6_71, %c0_72], %148 {strides = array<i32>} : memref<16x128xf32, #tpu.memory_space<vmem>>, vector<1x128xf32>,
    %c3_73 = arith.constant 3 : index
    %c0_74 = arith.constant 0 : index
    %150 = vector.load %arg3[%c3_73, %c0_74] : memref<16x128xf32, #tpu.memory_space<vmem>>, vector<1x128xf32>
    %151 = arith.mulf %39, %150 : vector<1x128xf32>
    %c7_75 = arith.constant 7 : index
    %c0_76 = arith.constant 0 : index
    %152 = vector.load %arg3[%c7_75, %c0_76] : memref<16x128xf32, #tpu.memory_space<vmem>>, vector<1x128xf32>
    %153 = arith.mulf %44, %152 : vector<1x128xf32>
    %154 = arith.addf %151, %153 : vector<1x128xf32>
    %c11_77 = arith.constant 11 : index
    %c0_78 = arith.constant 0 : index
    %155 = vector.load %arg3[%c11_77, %c0_78] : memref<16x128xf32, #tpu.memory_space<vmem>>, vector<1x128xf32>
    %156 = arith.mulf %50, %155 : vector<1x128xf32>
    %157 = arith.addf %154, %156 : vector<1x128xf32>
    %c15_79 = arith.constant 15 : index
    %c0_80 = arith.constant 0 : index
    %158 = vector.load %arg3[%c15_79, %c0_80] : memref<16x128xf32, #tpu.memory_space<vmem>>, vector<1x128xf32>
    %159 = arith.mulf %4, %158 : vector<1x128xf32>
    %160 = arith.addf %157, %159 : vector<1x128xf32>
    %c7_81 = arith.constant 7 : index
    %c0_82 = arith.constant 0 : index
    %161 = vector.load %arg4[%c7_81, %c0_82] : memref<16x128xf32, #tpu.memory_space<vmem>>, vector<1x128xf32>
    tpu.vector_store %arg4[%c7_81, %c0_82], %160 {strides = array<i32>} : memref<16x128xf32, #tpu.memory_space<vmem>>, vector<1x128xf32>,
    %c0_83 = arith.constant 0 : index
    %c0_84 = arith.constant 0 : index
    %162 = vector.load %arg3[%c0_83, %c0_84] : memref<16x128xf32, #tpu.memory_space<vmem>>, vector<1x128xf32>
    %163 = arith.mulf %56, %162 : vector<1x128xf32>
    %c4_85 = arith.constant 4 : index
    %c0_86 = arith.constant 0 : index
    %164 = vector.load %arg3[%c4_85, %c0_86] : memref<16x128xf32, #tpu.memory_space<vmem>>, vector<1x128xf32>
    %165 = arith.mulf %60, %164 : vector<1x128xf32>
    %166 = arith.addf %163, %165 : vector<1x128xf32>
    %c8_87 = arith.constant 8 : index
    %c0_88 = arith.constant 0 : index
    %167 = vector.load %arg3[%c8_87, %c0_88] : memref<16x128xf32, #tpu.memory_space<vmem>>, vector<1x128xf32>
    %168 = arith.mulf %65, %167 : vector<1x128xf32>
    %169 = arith.addf %166, %168 : vector<1x128xf32>
    %c12_89 = arith.constant 12 : index
    %c0_90 = arith.constant 0 : index
    %170 = vector.load %arg3[%c12_89, %c0_90] : memref<16x128xf32, #tpu.memory_space<vmem>>, vector<1x128xf32>
    %171 = arith.mulf %5, %170 : vector<1x128xf32>
    %172 = arith.addf %169, %171 : vector<1x128xf32>
    %c8_91 = arith.constant 8 : index
    %c0_92 = arith.constant 0 : index
    %173 = vector.load %arg4[%c8_91, %c0_92] : memref<16x128xf32, #tpu.memory_space<vmem>>, vector<1x128xf32>
    tpu.vector_store %arg4[%c8_91, %c0_92], %172 {strides = array<i32>} : memref<16x128xf32, #tpu.memory_space<vmem>>, vector<1x128xf32>,
    %c1_93 = arith.constant 1 : index
    %c0_94 = arith.constant 0 : index
    %174 = vector.load %arg3[%c1_93, %c0_94] : memref<16x128xf32, #tpu.memory_space<vmem>>, vector<1x128xf32>
    %175 = arith.mulf %56, %174 : vector<1x128xf32>
    %c5_95 = arith.constant 5 : index
    %c0_96 = arith.constant 0 : index
    %176 = vector.load %arg3[%c5_95, %c0_96] : memref<16x128xf32, #tpu.memory_space<vmem>>, vector<1x128xf32>
    %177 = arith.mulf %60, %176 : vector<1x128xf32>
    %178 = arith.addf %175, %177 : vector<1x128xf32>
    %c9_97 = arith.constant 9 : index
    %c0_98 = arith.constant 0 : index
    %179 = vector.load %arg3[%c9_97, %c0_98] : memref<16x128xf32, #tpu.memory_space<vmem>>, vector<1x128xf32>
    %180 = arith.mulf %65, %179 : vector<1x128xf32>
    %181 = arith.addf %178, %180 : vector<1x128xf32>
    %c13_99 = arith.constant 13 : index
    %c0_100 = arith.constant 0 : index
    %182 = vector.load %arg3[%c13_99, %c0_100] : memref<16x128xf32, #tpu.memory_space<vmem>>, vector<1x128xf32>
    %183 = arith.mulf %5, %182 : vector<1x128xf32>
    %184 = arith.addf %181, %183 : vector<1x128xf32>
    %c9_101 = arith.constant 9 : index
    %c0_102 = arith.constant 0 : index
    %185 = vector.load %arg4[%c9_101, %c0_102] : memref<16x128xf32, #tpu.memory_space<vmem>>, vector<1x128xf32>
    tpu.vector_store %arg4[%c9_101, %c0_102], %184 {strides = array<i32>} : memref<16x128xf32, #tpu.memory_space<vmem>>, vector<1x128xf32>,
    %c2_103 = arith.constant 2 : index
    %c0_104 = arith.constant 0 : index
    %186 = vector.load %arg3[%c2_103, %c0_104] : memref<16x128xf32, #tpu.memory_space<vmem>>, vector<1x128xf32>
    %187 = arith.mulf %56, %186 : vector<1x128xf32>
    %c6_105 = arith.constant 6 : index
    %c0_106 = arith.constant 0 : index
    %188 = vector.load %arg3[%c6_105, %c0_106] : memref<16x128xf32, #tpu.memory_space<vmem>>, vector<1x128xf32>
    %189 = arith.mulf %60, %188 : vector<1x128xf32>
    %190 = arith.addf %187, %189 : vector<1x128xf32>
    %c10_107 = arith.constant 10 : index
    %c0_108 = arith.constant 0 : index
    %191 = vector.load %arg3[%c10_107, %c0_108] : memref<16x128xf32, #tpu.memory_space<vmem>>, vector<1x128xf32>
    %192 = arith.mulf %65, %191 : vector<1x128xf32>
    %193 = arith.addf %190, %192 : vector<1x128xf32>
    %c14_109 = arith.constant 14 : index
    %c0_110 = arith.constant 0 : index
    %194 = vector.load %arg3[%c14_109, %c0_110] : memref<16x128xf32, #tpu.memory_space<vmem>>, vector<1x128xf32>
    %195 = arith.mulf %5, %194 : vector<1x128xf32>
    %196 = arith.addf %193, %195 : vector<1x128xf32>
    %c10_111 = arith.constant 10 : index
    %c0_112 = arith.constant 0 : index
    %197 = vector.load %arg4[%c10_111, %c0_112] : memref<16x128xf32, #tpu.memory_space<vmem>>, vector<1x128xf32>
    tpu.vector_store %arg4[%c10_111, %c0_112], %196 {strides = array<i32>} : memref<16x128xf32, #tpu.memory_space<vmem>>, vector<1x128xf32>,
    %c3_113 = arith.constant 3 : index
    %c0_114 = arith.constant 0 : index
    %198 = vector.load %arg3[%c3_113, %c0_114] : memref<16x128xf32, #tpu.memory_space<vmem>>, vector<1x128xf32>
    %199 = arith.mulf %56, %198 : vector<1x128xf32>
    %c7_115 = arith.constant 7 : index
    %c0_116 = arith.constant 0 : index
    %200 = vector.load %arg3[%c7_115, %c0_116] : memref<16x128xf32, #tpu.memory_space<vmem>>, vector<1x128xf32>
    %201 = arith.mulf %60, %200 : vector<1x128xf32>
    %202 = arith.addf %199, %201 : vector<1x128xf32>
    %c11_117 = arith.constant 11 : index
    %c0_118 = arith.constant 0 : index
    %203 = vector.load %arg3[%c11_117, %c0_118] : memref<16x128xf32, #tpu.memory_space<vmem>>, vector<1x128xf32>
    %204 = arith.mulf %65, %203 : vector<1x128xf32>
    %205 = arith.addf %202, %204 : vector<1x128xf32>
    %c15_119 = arith.constant 15 : index
    %c0_120 = arith.constant 0 : index
    %206 = vector.load %arg3[%c15_119, %c0_120] : memref<16x128xf32, #tpu.memory_space<vmem>>, vector<1x128xf32>
    %207 = arith.mulf %5, %206 : vector<1x128xf32>
    %208 = arith.addf %205, %207 : vector<1x128xf32>
    %c11_121 = arith.constant 11 : index
    %c0_122 = arith.constant 0 : index
    %209 = vector.load %arg4[%c11_121, %c0_122] : memref<16x128xf32, #tpu.memory_space<vmem>>, vector<1x128xf32>
    tpu.vector_store %arg4[%c11_121, %c0_122], %208 {strides = array<i32>} : memref<16x128xf32, #tpu.memory_space<vmem>>, vector<1x128xf32>,
    %c12_123 = arith.constant 12 : index
    %c0_124 = arith.constant 0 : index
    %210 = vector.load %arg3[%c12_123, %c0_124] : memref<16x128xf32, #tpu.memory_space<vmem>>, vector<1x128xf32>
    %c12_125 = arith.constant 12 : index
    %c0_126 = arith.constant 0 : index
    %211 = vector.load %arg4[%c12_125, %c0_126] : memref<16x128xf32, #tpu.memory_space<vmem>>, vector<1x128xf32>
    tpu.vector_store %arg4[%c12_125, %c0_126], %210 {strides = array<i32>} : memref<16x128xf32, #tpu.memory_space<vmem>>, vector<1x128xf32>,
    %c13_127 = arith.constant 13 : index
    %c0_128 = arith.constant 0 : index
    %212 = vector.load %arg3[%c13_127, %c0_128] : memref<16x128xf32, #tpu.memory_space<vmem>>, vector<1x128xf32>
    %c13_129 = arith.constant 13 : index
    %c0_130 = arith.constant 0 : index
    %213 = vector.load %arg4[%c13_129, %c0_130] : memref<16x128xf32, #tpu.memory_space<vmem>>, vector<1x128xf32>
    tpu.vector_store %arg4[%c13_129, %c0_130], %212 {strides = array<i32>} : memref<16x128xf32, #tpu.memory_space<vmem>>, vector<1x128xf32>,
    %c14_131 = arith.constant 14 : index
    %c0_132 = arith.constant 0 : index
    %214 = vector.load %arg3[%c14_131, %c0_132] : memref<16x128xf32, #tpu.memory_space<vmem>>, vector<1x128xf32>
    %c14_133 = arith.constant 14 : index
    %c0_134 = arith.constant 0 : index
    %215 = vector.load %arg4[%c14_133, %c0_134] : memref<16x128xf32, #tpu.memory_space<vmem>>, vector<1x128xf32>
    tpu.vector_store %arg4[%c14_133, %c0_134], %214 {strides = array<i32>} : memref<16x128xf32, #tpu.memory_space<vmem>>, vector<1x128xf32>,
    %c15_135 = arith.constant 15 : index
    %c0_136 = arith.constant 0 : index
    %216 = vector.load %arg3[%c15_135, %c0_136] : memref<16x128xf32, #tpu.memory_space<vmem>>, vector<1x128xf32>
    %c15_137 = arith.constant 15 : index
    %c0_138 = arith.constant 0 : index
    %217 = vector.load %arg4[%c15_137, %c0_138] : memref<16x128xf32, #tpu.memory_space<vmem>>, vector<1x128xf32>
    tpu.vector_store %arg4[%c15_137, %c0_138], %216 {strides = array<i32>} : memref<16x128xf32, #tpu.memory_space<vmem>>, vector<1x128xf32>,
    return
  }
  func.func @transform_0(%arg0: i32) -> (i32, i32) {
    %c0_i32 = arith.constant 0 : i32
    %c0_i32_0 = arith.constant 0 : i32
    return %c0_i32, %arg0 : i32, i32
  }
  func.func @transform_1(%arg0: i32) -> (i32, i32) {
    %c0_i32 = arith.constant 0 : i32
    %c0_i32_0 = arith.constant 0 : i32
    return %c0_i32, %arg0 : i32, i32
  }
  func.func @transform_2(%arg0: i32) -> (i32, i32) {
    %c0_i32 = arith.constant 0 : i32
    %c0_i32_0 = arith.constant 0 : i32
    return %c0_i32, %arg0 : i32, i32
  }
  func.func @transform_3(%arg0: i32) -> (i32, i32) {
    %c0_i32 = arith.constant 0 : i32
    %c0_i32_0 = arith.constant 0 : i32
    return %c0_i32, %arg0 : i32, i32
  }
}

</mosaic_0001>

<bundles_post_ra>
// kernel: learn_pose_forward_all.1
= control target key start
LH: loop header
LB: loop body
LE: loop exit
PB: predicated region body
PF: predicated region fallthrough
CT: control target
= control target key end

     0   :  { %s1035_s0 = inlined_call_operand.vmem [shape: f32[3,128], index: 0, kind: input, shape index: {}]   ;;  %s1036_s1 = inlined_call_operand.vmem [shape: f32[3,128], index: 1, kind: input, shape index: {}]   ;;  %s1037_s2 = inlined_call_operand.vmem [shape: f32[16,128], index: 2, kind: input, shape index: {}]   ;;  %s1038_s3 = inlined_call_operand.hbm [shape: f32[16,128], index: 3, kind: output, shape index: {}]  }
   0x1   :  { %v659_v0 = vld [vmem:[%s1035_s0] sm:$0x1]  ;;  %v664_v1 = vld [vmem:[%s1035_s0 + $0x1] sm:$0x1]  ;;  %v669_v2 = vld [vmem:[%s1035_s0 + $0x2] sm:$0x1] }
   0x2   :  { %v673_v3 = vmul.f32 %v659_v0, %v659_v0  ;;  %v677_v4 = vmul.f32 %v664_v1, %v664_v1  ;;  %v681_v5 = vmul.f32 %v669_v2, %v669_v2 }
   0x3   :  { %8 = vsyncpa [#allocation3], 0  ;;  %v626_v30 = vmov 683565275   ;;  %v627_v32 = vmov 2475754826  }
   0x4   :  { %v23_v6 = vadd.f32 %v677_v4, %v673_v3  ;;  %v628_v34 = vmov 2131351028   ;;  %v629_v36 = vmov 2102212464   ;;  %v630_v38 = vmov 920167782  }
   0x5   :  { %v631_v44 = vmov 1326507024   ;;  %s633_s7 = smov [#allocation2]   ;;  %s634_s11 = smov 128  }
   0x6   :  { %v686_v7 = vadd.f32 %v681_v5, %v23_v6  ;;  %s564_s8 = sshll.u32 %s633_s7, 4  ;;  %s635_s12 = smov 8   ;;  %s565_s8 = int_to_ptr.vmem [resolvable:$true] %s564_s8 }
   0x8   :  { %594 = vrsqrt.f32 %v686_v7  ;;  %vm33_vm0 = vcmp.eq.f32.partialorder %v686_v7, inf  ;;  %v36_v14 = vand.u32 2147483648, %v686_v7  ;;  %vm35_vm1 = vcmp.eq.f32.partialorder %v686_v7, 0.0 }
   0xe   :  { %v595_v8 = vpop.eup %594 }
   0xf   :  { %v27_v9 = vmul.f32 %v595_v8, %v686_v7 }
  0x11   :  { %v28_v10 = vmul.f32 %v595_v8, %v27_v9 }
  0x13   :  { %v29_v11 = vmul.f32 0.5, %v28_v10 }
  0x15   :  { %v30_v12 = vsub.f32 1.5, %v29_v11 }
  0x17   :  { %v31_v13 = vmul.f32 %v595_v8, %v30_v12 }
  0x19   :  { %v32_v15 = vmul.f32 %v31_v13, %v686_v7 }
  0x1b   :  { %v34_v16 = vsel %vm33_vm0, %v686_v7, %v32_v15 }
  0x1c   :  { %v37_v17 = vsel %vm35_vm1, %v36_v14, %v34_v16 }
  0x1d   :  { %v695_v18 = vadd.f32 1e-15, %v37_v17 }
  0x1f   :  { %v42_v19 = vand.u32 2139095040, %v695_v18  ;;  %v699_v21 = vand.u32 2147483647, %v695_v18  ;;  %596 = vrcp.f32 %v695_v18  ;;  %vm41_vm14 = vcmp.lt.s32.totalorder %v695_v18, 0 }
  0x20   :  { %vm182_vm0 = vweird.f32 %v695_v18 }
  0x21   :  { %v43_v20 = vshrl.u32 %v42_v19, 23  ;;  %v46_v24 = vand.u32 8388607, %v699_v21  ;;  %vm40_vm15 = vcmp.le.f32.partialorder %v699_v21, 0.7853982 }
  0x23   :  { %v578_v22 = vadd.s32 4294967169, %v43_v20  ;;  %v47_v27 = vor.u32 8388608, %v46_v24 }
  0x25   :  { %v49_v23 = vadd.s32 1, %v578_v22  ;;  %v705_v46 = vshll.u32 %v47_v27, 8  ;;  %v632_v27 = vmov 0  }
  0x27   :  { %vm50_vm2 = vcmp.gt.s32.totalorder %v49_v23, 0  ;;  %v88_v58 = vand.u32 65535, %v705_v46  ;;  %v89_v59 = vshrl.u32 %v705_v46, 16 }
  0x28   :  { %v51_v25 = vsel %vm50_vm2, %v49_v23, 0 }
  0x29   :  { %v53_v26 = vand.u32 31, %v51_v25  ;;  %v702_v28 = vshrl.u32 %v51_v25, 5 }
  0x2b   :  { %v54_v29 = vsub.s32 32, %v53_v26  ;;  %v56_v31 = vshll.u32 %v626_v30, %v53_v26  ;;  %v59_v33 = vshll.u32 %v627_v32, %v53_v26  ;;  %v62_v35 = vshll.u32 %v628_v34, %v53_v26 }
  0x2c   :  { %v65_v37 = vshll.u32 %v629_v36, %v53_v26  ;;  %v68_v39 = vshll.u32 %v630_v38, %v53_v26  ;;  %vm71_vm3 = vcmp.lt.s32.totalorder %v702_v28, 1  ;;  %vm74_vm4 = vcmp.lt.s32.totalorder %v702_v28, 4 }
  0x2d   :  { %v57_v40 = vshrl.u32 %v627_v32, %v54_v29  ;;  %v60_v41 = vshrl.u32 %v628_v34, %v54_v29  ;;  %v63_v42 = vshrl.u32 %v629_v36, %v54_v29  ;;  %v66_v43 = vshrl.u32 %v630_v38, %v54_v29 }
  0x2e   :  { %v69_v45 = vshrl.u32 %v631_v44, %v54_v29  ;;  %vm73_vm5 = vcmp.lt.s32.totalorder %v702_v28, 3  ;;  %vm72_vm6 = vcmp.lt.s32.totalorder %v702_v28, 2  ;;  %v55_v9 = vshrl.u32 %v626_v30, %v54_v29 }
  0x2f   :  { %v58_v47 = vor.u32 %v57_v40, %v56_v31  ;;  %v61_v48 = vor.u32 %v60_v41, %v59_v33  ;;  %v64_v49 = vor.u32 %v63_v42, %v62_v35  ;;  %v67_v50 = vor.u32 %v66_v43, %v65_v37 }
  0x30   :  { %v70_v51 = vor.u32 %v69_v45, %v68_v39 }
  0x31   :  { %v79_v52 = vsel %vm71_vm3, %v58_v47, %v61_v48  ;;  %v83_v53 = vsel %vm71_vm3, %v61_v48, %v64_v49  ;;  %v80_v54 = vsel %vm74_vm4, %v67_v50, 920167782  ;;  %v75_v24 = vsel %vm71_vm3, %v55_v9, %v58_v47 }
  0x32   :  { %v84_v55 = vsel %vm74_vm4, %v70_v51, 1326507024  ;;  %v81_v56 = vsel %vm73_vm5, %v64_v49, %v80_v54  ;;  %v76_v26 = vsel %vm74_vm4, %v64_v49, 2102212464 }
  0x33   :  { %v85_v57 = vsel %vm73_vm5, %v67_v50, %v84_v55  ;;  %v82_v60 = vsel %vm72_vm6, %v79_v52, %v81_v56  ;;  %v77_v37 = vsel %vm73_vm5, %v61_v48, %v76_v26 }
  0x34   :  { %v86_v61 = vsel %vm72_vm6, %v83_v53, %v85_v57  ;;  %v112_v6 = vand.u32 65535, %v82_v60  ;;  %v113_v8 = vshrl.u32 %v82_v60, 16  ;;  %v78_v45 = vsel %vm72_vm6, %v75_v24, %v77_v37 }
  0x35   :  { %v90_v62 = vand.u32 65535, %v86_v61  ;;  %v91_v63 = vshrl.u32 %v86_v61, 16  ;;  %v132_v51 = vmul.u32 %v705_v46, %v78_v45 }
  0x36   :  { %v114_v13 = vmul.u32 %v112_v6, %v88_v58  ;;  %v115_v14 = vmul.u32 %v113_v8, %v88_v58  ;;  %v116_v15 = vmul.u32 %v112_v6, %v89_v59  ;;  %v117_v20 = vmul.u32 %v113_v8, %v89_v59 }
  0x37   :  { %v92_v10 = vmul.u32 %v90_v62, %v88_v58  ;;  %v93_v11 = vmul.u32 %v91_v63, %v88_v58  ;;  %v94_v12 = vmul.u32 %v90_v62, %v89_v59  ;;  %v95_v16 = vmul.u32 %v91_v63, %v89_v59 }
  0x38   :  { %v118_v22 = vshll.u32 %v115_v14, 16  ;;  %v120_v23 = vshll.u32 %v116_v15, 16  ;;  %v119_v35 = vshrl.u32 %v115_v14, 16  ;;  %v121_v41 = vshrl.u32 %v116_v15, 16 }
  0x39   :  { %v96_v17 = vshll.u32 %v93_v11, 16  ;;  %v98_v19 = vshll.u32 %v94_v12, 16  ;;  %v97_v31 = vshrl.u32 %v93_v11, 16  ;;  %v99_v38 = vshrl.u32 %v94_v12, 16 }
  0x3a   :  { %vm122_vm8 = vc.u32 %v114_v13, %v118_v22  ;;  %v124_v30 = vadd.s32 %v118_v22, %v114_v13 }
  0x3b   :  { %vm100_vm7 = vc.u32 %v92_v10, %v96_v17  ;;  %v102_v25 = vadd.s32 %v96_v17, %v92_v10  ;;  %v123_v33 = vsel %vm122_vm8, 1, %v632_v27  ;;  %v739_v10 = vmul.f32 %v695_v18, %v695_v18  ;;  %v743_v17 = vpop.eup %596 }
  0x3c   :  { %v101_v29 = vsel %vm100_vm7, 1, %v632_v27  ;;  %v125_v36 = vadd.s32 %v123_v33, %v117_v20  ;;  %vm126_vm10 = vc.u32 %v124_v30, %v120_v23  ;;  %v128_v44 = vadd.s32 %v124_v30, %v120_v23 }
  0x3d   :  { %v103_v32 = vadd.s32 %v101_v29, %v95_v16  ;;  %vm104_vm9 = vc.u32 %v102_v25, %v98_v19  ;;  %v127_v40 = vsel %vm126_vm10, 1, %v632_v27  ;;  %598 = vrcp.f32 %v739_v10 }
  0x3e   :  { %v105_v34 = vsel %vm104_vm9, 1, %v632_v27  ;;  %v129_v42 = vadd.s32 %v127_v40, %v125_v36  ;;  %v195_v24 = vmul.f32 %v743_v17, %v695_v18  ;;  %vm200_vm1 = vweird.f32 %v743_v17 }
  0x3f   :  { %v107_v39 = vadd.s32 %v105_v34, %v103_v32  ;;  %vm370_vm2 = vweird.f32 %v739_v10  ;;  %vm764_vm4 = vmor %vm182_vm0, %vm200_vm1  ;;  %vm204_vm10 = vcmp.eq.f32.partialorder %v699_v21, 8.507059e+37  ;;  %v416_v21 = vld [vmem:[%s1037_s2 + $0xc] sm:$0x1] }
  0x40   :  { %v130_v47 = vadd.s32 %v129_v42, %v119_v35 }
  0x41   :  { %v108_v43 = vadd.s32 %v107_v39, %v97_v31  ;;  %v196_v31 = vsub.f32 1.0, %v195_v24  ;;  %v476_v24 = vld [vmem:[%s1037_s2 + $0xd] sm:$0x1] }
  0x42   :  { %v131_v50 = vadd.s32 %v130_v47, %v121_v41  ;;  %v205_v47 = vand.u32 2147483648, %v695_v18 }
  0x43   :  { %v109_v49 = vadd.s32 %v108_v43, %v99_v38  ;;  %v747_v22 = vpop.eup %598  ;;  %v197_v38 = vmul.f32 %v743_v17, %v196_v31  ;;  %v837_v31 = vld [vmem:[%s1036_s1 + $0x2] sm:$0x1] }
  0x44   :  { %v135_v52 = vadd.s32 1, %v131_v50  ;;  %v366_v30 = vmul.f32 %v747_v22, %v739_v10  ;;  %vm371_vm3 = vweird.f32 %v747_v22 }
  0x45   :  { %vm134_vm11 = vc.u32 %v109_v49, %v128_v44  ;;  %v133_v28 = vadd.s32 %v128_v44, %v109_v49  ;;  %v198_v45 = vadd.f32 %v743_v17, %v197_v38  ;;  %vm771_vm9 = vmor %vm370_vm2, %vm371_vm3 }
  0x46   :  { %v136_v53 = vsel %vm134_vm11, %v135_v52, %v131_v50  ;;  %v367_v37 = vsub.f32 1.0, %v366_v30  ;;  %v500_v30 = vld [vmem:[%s1037_s2 + $0xf] sm:$0x1] }
  0x47   :  { %v137_v54 = vadd.s32 %v136_v53, %v132_v51  ;;  %v374_v53 = vand.u32 2147483647, %v739_v10 }
  0x48   :  { %v368_v44 = vmul.f32 %v747_v22, %v367_v37  ;;  %v512_v37 = vld [vmem:[%s1037_s2 + $0xc] sm:$0x1] }
  0x49   :  { %v138_v48 = vadd.s32 536870912, %v137_v54 }
  0x4b   :  { %v139_v55 = vshrl.u32 %v138_v48, 30 }
  0x4d   :  { %v140_v56 = vshll.u32 %v139_v55, 30  ;;  %v163_v16 = vsub.s32 4, %v139_v55 }
  0x4f   :  { %v141_v57 = vsub.s32 %v137_v54, %v140_v56  ;;  %v164_v23 = vsel %vm41_vm14, %v163_v16, %v139_v55  ;;  %v376_v54 = vand.u32 2147483648, %v739_v10  ;;  %v369_v56 = vadd.f32 %v747_v22, %v368_v44  ;;  %v428_v10 = vld [vmem:[%s1037_s2 + $0xd] sm:$0x1]  ;;  %v452_v16 = vld [vmem:[%s1037_s2 + $0xf] sm:$0x1] }
  0x50   :  { %v166_v27 = vsel %vm40_vm15, 0, %v164_v23  ;;  %v464_v23 = vld [vmem:[%s1037_s2 + $0xc] sm:$0x1] }
  0x51   :  { %vm142_vm12 = vcmp.lt.s32.totalorder %v141_v57, 0  ;;  %v143_v58 = vsub.s32 0, %v141_v57  ;;  %v183_v34 = vadd.s32 3, %v166_v27  ;;  %v353_v49 = vand.u32 3, %v166_v27 }
  0x53   :  { %v144_v59 = vsel %vm142_vm12, %v143_v58, %v141_v57  ;;  %v184_v41 = vand.u32 3, %v183_v34  ;;  %vm358_vm8 = vcmp.eq.s32.totalorder %v353_v49, 2  ;;  %vm354_vm11 = vcmp.lt.s32.totalorder %v353_v49, 2 }
  0x54   :  { %v145_v60 = vclz %v144_v59  ;;  %vm355_vm12 = vcmp.eq.s32.totalorder %v353_v49, 0 }
  0x55   :  { %vm185_vm5 = vcmp.lt.s32.totalorder %v184_v41, 2  ;;  %vm186_vm6 = vcmp.eq.s32.totalorder %v184_v41, 0  ;;  %vm189_vm7 = vcmp.eq.s32.totalorder %v184_v41, 2  ;;  %v405_v41 = vsub.f32 %v681_v5, %v686_v7  ;;  %v521_v5 = vld [vmem:[%s1037_s2 + $0x9] sm:$0x1] }
  0x56   :  { %v579_v61 = vadd.s32 4294967294, %v145_v60 }
  0x58   :  { %vm580_vm13 = vcmp.lt.s32.totalorder %v579_v61, 0 }
  0x59   :  { %v148_v62 = vsel %vm580_vm13, 0, %v579_v61  ;;  %v202_v61 = vsel %vm764_vm4, %v743_v17, %v198_v45  ;;  %vm782_vm13 = vcmp.eq.f32.partialorder %v374_v53, 8.507059e+37  ;;  %v19_v17 = vld [vmem:[%s1036_s1 + $0x1] sm:$0x1]  ;;  %v408_v53 = vld [vmem:[%s1037_s2] sm:$0x1] }
  0x5a   :  { %v149_v63 = vsub.s32 32, %v148_v62  ;;  %v150_v6 = vshll.u32 %v141_v57, %v148_v62  ;;  %v153_v8 = vsub.s32 4294967266, %v148_v62  ;;  %v206_v57 = vor.u32 1.1754944e-38, %v205_v47  ;;  %v422_v62 = vld [vmem:[%s1037_s2 + $0x5] sm:$0x1] }
  0x5b   :  { %v865_v44 = vmul.f32 %v476_v24, %v19_v17  ;;  %v869_v47 = vmul.f32 %v500_v30, %v19_v17 }
  0x5c   :  { %v151_v46 = vshrl.u32 %v133_v28, %v149_v63  ;;  %v154_v9 = vadd.s32 127, %v153_v8  ;;  %v18_v28 = vld [vmem:[%s1036_s1] sm:$0x1]  ;;  %v377_v63 = vor.u32 1.1754944e-38, %v376_v54 }
  0x5e   :  { %v152_v11 = vor.u32 %v151_v46, %v150_v6  ;;  %v155_v12 = vshll.u32 %v154_v9, 23  ;;  %v373_v9 = vsel %vm771_vm9, %v747_v22, %v369_v56  ;;  %v398_v22 = vmul.f32 %v669_v2, %v664_v1 }
  0x60   :  { %v156_v13 = vor.u32 4788187, %v155_v12  ;;  %v159_v14 = vcvt.s32.f32 %v152_v11  ;;  %v207_v11 = vsel %vm204_vm10, %v206_v57, %v202_v61  ;;  %v380_v12 = vsub.f32 %v673_v3, %v686_v7  ;;  %v410_v61 = vld [vmem:[%s1037_s2 + $0x4] sm:$0x1] }
  0x62   :  { %v157_v15 = vand.u32 2147483647, %v156_v13  ;;  %v385_v13 = vmul.f32 %v664_v1, %v659_v0 }
  0x64   :  { %v160_v19 = vmul.f32 %v159_v14, %v157_v15  ;;  %v389_v14 = vmul.f32 %v669_v2, %v659_v0  ;;  %v440_v15 = vld [vmem:[%s1037_s2 + $0xe] sm:$0x1] }
  0x66   :  { %v161_v20 = vxor.u32 2147483648, %v160_v19 }
  0x68   :  { %v162_v25 = vsel %vm41_vm14, %v161_v20, %v160_v19  ;;  %v394_v20 = vsub.f32 %v677_v4, %v686_v7  ;;  %v378_v4 = vsel %vm782_vm13, %v377_v63, %v373_v9  ;;  %v432_v63 = vld [vmem:[%s1037_s2 + $0x2] sm:$0x1]  ;;  %v533_v7 = vld [vmem:[%s1037_s2 + $0xa] sm:$0x1] }
  0x69   :  { %v165_v26 = vsel %vm40_vm15, %v695_v18, %v162_v25  ;;  %v488_v25 = vld [vmem:[%s1037_s2 + $0xe] sm:$0x1]  ;;  %v524_v18 = vld [vmem:[%s1037_s2 + $0xd] sm:$0x1] }
  0x6a   :  { %v167_v29 = vmul.f32 %v165_v26, %v165_v26  ;;  %v867_v45 = vmul.f32 %v488_v25, %v19_v17  ;;  %v449_v25 = vld [vmem:[%s1037_s2 + $0xb] sm:$0x1] }
  0x6c   :  { %v168_v32 = vmul.f32 -0.001358992, %v167_v29  ;;  %v175_v33 = vmul.f32 -0.00019511016, %v167_v29 }
  0x6e   :  { %v169_v35 = vadd.f32 0.041655596, %v168_v32  ;;  %v176_v36 = vadd.f32 0.008332121, %v175_v33  ;;  %v552_v32 = vld [vmem:[%s1037_s2 + $0xc] sm:$0xf]  }
  0x6f   :  { %553 = vst [vmem:[#allocation2 + $0xc] sm:$0xf] %v552_v32  }
  0x70   :  { %v170_v39 = vmul.f32 %v169_v35, %v167_v29  ;;  %v177_v40 = vmul.f32 %v176_v36, %v167_v29  ;;  %v846_v35 = vmul.f32 %v428_v10, %v18_v28  ;;  %v848_v36 = vmul.f32 %v440_v15, %v18_v28 }
  0x72   :  { %v171_v42 = vadd.f32 -0.4999988, %v170_v39  ;;  %v178_v43 = vadd.f32 -0.16666654, %v177_v40  ;;  %v853_v40 = vmul.f32 %v452_v16, %v18_v28 }
  0x74   :  { %v172_v50 = vmul.f32 %v171_v42, %v167_v29  ;;  %v179_v51 = vmul.f32 %v178_v43, %v167_v29  ;;  %v829_v29 = vmul.f32 %v416_v21, %v18_v28  ;;  %v536_v42 = vld [vmem:[%s1037_s2 + $0xe] sm:$0x1]  ;;  %v863_v43 = vmul.f32 %v464_v23, %v19_v17  ;;  %v420_v28 = vld [vmem:[%s1037_s2 + $0x1] sm:$0x1] }
  0x75   :  { %v886_v56 = vmul.f32 %v536_v42, %v837_v31  ;;  %v468_v42 = vld [vmem:[%s1037_s2 + $0x1] sm:$0x1] }
  0x76   :  { %v173_v48 = vadd.f32 1.0, %v172_v50  ;;  %v180_v55 = vadd.f32 1.0, %v179_v51 }
  0x78   :  { %v181_v59 = vmul.f32 %v180_v55, %v165_v26  ;;  %v190_v60 = vxor.u32 2147483648, %v173_v48  ;;  %v883_v55 = vmul.f32 %v524_v18, %v837_v31 }
  0x7a   :  { %v187_v6 = vxor.u32 2147483648, %v181_v59  ;;  %v191_v8 = vsel %vm189_vm7, %v190_v60, %v181_v59  ;;  %v360_v46 = vsel %vm358_vm8, %v190_v60, %v181_v59 }
  0x7c   :  { %v188_v3 = vsel %vm186_vm6, %v173_v48, %v187_v6  ;;  %v357_v19 = vsel %vm355_vm12, %v173_v48, %v187_v6  ;;  %v880_v48 = vmul.f32 %v512_v37, %v837_v31  ;;  %v434_v6 = vld [vmem:[%s1037_s2 + $0x6] sm:$0x1] }
  0x7d   :  { %v192_v26 = vsel %vm185_vm5, %v188_v3, %v191_v8  ;;  %v361_v27 = vsel %vm354_vm11, %v357_v19, %v360_v46 }
  0x7e   :  { %v193_v33 = vsel %vm182_vm0, nan, %v192_v26  ;;  %v362_v34 = vsel %vm182_vm0, nan, %v361_v27  ;;  %v456_v26 = vld [vmem:[%s1037_s2] sm:$0x1] }
  0x7f   :  { %v208_v38 = vmul.f32 %v207_v11, %v193_v33  ;;  %v363_v39 = vsub.f32 1.0, %v362_v34  ;;  %v458_v33 = vld [vmem:[%s1037_s2 + $0x4] sm:$0x1]  ;;  %v461_v34 = vld [vmem:[%s1037_s2 + $0x8] sm:$0x1] }
  0x81   :  { %v871_v49 = vmul.f32 %v378_v4, %v363_v39  ;;  %v383_v50 = vsub.f32 0.0, %v208_v38  ;;  %v388_v51 = vmul.f32 %v208_v38, %v664_v1  ;;  %v392_v52 = vmul.f32 %v208_v38, %v669_v2 }
  0x82   :  { %v403_v54 = vmul.f32 %v208_v38, %v659_v0 }
  0x83   :  { %v381_v57 = vmul.f32 %v380_v12, %v871_v49  ;;  %v384_v58 = vmul.f32 %v383_v50, %v669_v2  ;;  %v386_v59 = vmul.f32 %v385_v13, %v871_v49  ;;  %v390_v60 = vmul.f32 %v389_v14, %v871_v49  ;;  %v413_v2 = vld [vmem:[%s1037_s2 + $0x8] sm:$0x1]  ;;  %v425_v13 = vld [vmem:[%s1037_s2 + $0x9] sm:$0x1]  ;;  %v444_v14 = vld [vmem:[%s1037_s2 + $0x3] sm:$0x1] }
  0x84   :  { %v395_v8 = vmul.f32 %v394_v20, %v871_v49  ;;  %v397_v46 = vmul.f32 %v383_v50, %v659_v0  ;;  %v399_v9 = vmul.f32 %v398_v22, %v871_v49  ;;  %v401_v21 = vmul.f32 %v383_v50, %v664_v1  ;;  %v437_v0 = vld [vmem:[%s1037_s2 + $0xa] sm:$0x1]  ;;  %v446_v1 = vld [vmem:[%s1037_s2 + $0x7] sm:$0x1]  ;;  %v470_v50 = vld [vmem:[%s1037_s2 + $0x5] sm:$0x1] }
  0x85   :  { %v382_v10 = vadd.f32 1.0, %v381_v57  ;;  %v387_v11 = vadd.f32 %v386_v59, %v384_v58  ;;  %v391_v12 = vadd.f32 %v390_v60, %v388_v51  ;;  %v393_v15 = vadd.f32 %v392_v52, %v386_v59  ;;  %v473_v57 = vld [vmem:[%s1037_s2 + $0x9] sm:$0x1] }
  0x86   :  { %v396_v16 = vadd.f32 1.0, %v395_v8  ;;  %v400_v17 = vadd.f32 %v399_v9, %v397_v46  ;;  %v926_v3 = vadd.f32 %v401_v21, %v390_v60  ;;  %v928_v19 = vadd.f32 %v403_v54, %v399_v9  ;;  %v482_v8 = vld [vmem:[%s1037_s2 + $0x6] sm:$0x1]  ;;  %v485_v46 = vld [vmem:[%s1037_s2 + $0xa] sm:$0x1] }
  0x87   :  { %v409_v20 = vmul.f32 %v408_v53, %v382_v10  ;;  %v411_v22 = vmul.f32 %v410_v61, %v387_v11  ;;  %v414_v23 = vmul.f32 %v413_v2, %v391_v12  ;;  %v421_v24 = vmul.f32 %v420_v28, %v382_v10  ;;  %v480_v28 = vld [vmem:[%s1037_s2 + $0x2] sm:$0x1] }
  0x88   :  { %v423_v27 = vmul.f32 %v422_v62, %v387_v11  ;;  %v426_v4 = vmul.f32 %v425_v13, %v391_v12  ;;  %v433_v30 = vmul.f32 %v432_v63, %v382_v10  ;;  %v435_v32 = vmul.f32 %v434_v6, %v387_v11  ;;  %v494_v13 = vld [vmem:[%s1037_s2 + $0x7] sm:$0x1] }
  0x89   :  { %v412_v37 = vadd.f32 %v411_v22, %v409_v20  ;;  %v438_v38 = vmul.f32 %v437_v0, %v391_v12  ;;  %v445_v39 = vmul.f32 %v444_v14, %v382_v10  ;;  %v447_v18 = vmul.f32 %v446_v1, %v387_v11  ;;  %v497_v14 = vld [vmem:[%s1037_s2 + $0xb] sm:$0x1]  ;;  %v504_v22 = vld [vmem:[%s1037_s2] sm:$0x1] }
  0x8a   :  { %v424_v51 = vadd.f32 %v423_v27, %v421_v24  ;;  %v436_v52 = vadd.f32 %v435_v32, %v433_v30  ;;  %v450_v53 = vmul.f32 %v449_v25, %v391_v12  ;;  %v457_v54 = vmul.f32 %v456_v26, %v393_v15  ;;  %v492_v12 = vld [vmem:[%s1037_s2 + $0x3] sm:$0x1]  ;;  %v506_v27 = vld [vmem:[%s1037_s2 + $0x4] sm:$0x1] }
  0x8b   :  { %v415_v58 = vadd.f32 %v414_v23, %v412_v37  ;;  %v448_v59 = vadd.f32 %v447_v18, %v445_v39  ;;  %v459_v60 = vmul.f32 %v458_v33, %v396_v16  ;;  %v462_v61 = vmul.f32 %v461_v34, %v400_v17  ;;  %v518_v33 = vld [vmem:[%s1037_s2 + $0x5] sm:$0x1]  ;;  %v528_v34 = vld [vmem:[%s1037_s2 + $0x2] sm:$0x1]  ;;  %v540_v39 = vld [vmem:[%s1037_s2 + $0x3] sm:$0x1] }
  0x8c   :  { %v427_v62 = vadd.f32 %v426_v4, %v424_v51  ;;  %v439_v2 = vadd.f32 %v438_v38, %v436_v52  ;;  %v469_v63 = vmul.f32 %v468_v42, %v393_v15  ;;  %v471_v6 = vmul.f32 %v470_v50, %v396_v16  ;;  %v542_v52 = vld [vmem:[%s1037_s2 + $0x7] sm:$0x1] }
  0x8d   :  { %v418_v9 = vadd.f32 %v829_v29, %v415_v58  ;;  %v451_v21 = vadd.f32 %v450_v53, %v448_v59  ;;  %v460_v10 = vadd.f32 %v459_v60, %v457_v54  ;;  %v474_v11 = vmul.f32 %v473_v57, %v400_v17  ;;  %v545_v59 = vld [vmem:[%s1037_s2 + $0xb] sm:$0x1] }
  0x8e   :  { %v430_v0 = vadd.f32 %v846_v35, %v427_v62  ;;  %v442_v1 = vadd.f32 %v848_v36, %v439_v2  ;;  %v472_v29 = vadd.f32 %v471_v6, %v469_v63  ;;  %v481_v20 = vmul.f32 %v480_v28, %v393_v15  ;;  %v516_v35 = vld [vmem:[%s1037_s2 + $0x1] sm:$0x1]  ;;  %v548_v2 = vld [vmem:[%s1037_s2 + $0xf] sm:$0x1] }
  0x8f   :  { %419 = vst [vmem:[#allocation2] sm:$0x1] %v418_v9  ;;  %v454_v23 = vadd.f32 %v853_v40, %v451_v21  ;;  %v463_v24 = vadd.f32 %v462_v61, %v460_v10  ;;  %v483_v25 = vmul.f32 %v482_v8, %v396_v16  ;;  %v486_v26 = vmul.f32 %v485_v46, %v400_v17  ;;  %v509_v40 = vld [vmem:[%s1037_s2 + $0x8] sm:$0x1] }
  0x90   :  { %431 = vst [vmem:[#allocation2 + $0x1] sm:$0x1] %v430_v0  ;;  %v475_v36 = vadd.f32 %v474_v11, %v472_v29  ;;  %v493_v4 = vmul.f32 %v492_v12, %v393_v15  ;;  %v495_v30 = vmul.f32 %v494_v13, %v396_v16  ;;  %v498_v32 = vmul.f32 %v497_v14, %v400_v17  ;;  %v530_v17 = vld [vmem:[%s1037_s2 + $0x6] sm:$0x1]  ;;  %s566_s2 = sshll.u32 %s1038_s3, 4  ;;  %s567_s2 = int_to_ptr.hbm [resolvable:$true] %s566_s2 }
  0x91   :  { %443 = vst [vmem:[#allocation2 + $0x2] sm:$0x1] %v442_v1  ;;  %v466_v37 = vadd.f32 %v863_v43, %v463_v24  ;;  %v484_v38 = vadd.f32 %v483_v25, %v481_v20  ;;  %v406_v15 = vmul.f32 %v405_v41, %v871_v49  ;;  %v505_v16 = vmul.f32 %v504_v22, %v926_v3 }
  0x92   :  { %455 = vst [vmem:[#allocation2 + $0x3] sm:$0x1] %v454_v23  ;;  %v478_v18 = vadd.f32 %v865_v44, %v475_v36  ;;  %v496_v43 = vadd.f32 %v495_v30, %v493_v4  ;;  %v507_v42 = vmul.f32 %v506_v27, %v928_v19  ;;  %v517_v50 = vmul.f32 %v516_v35, %v926_v3 }
  0x93   :  { %467 = vst [vmem:[#allocation2 + $0x4] sm:$0x1] %v466_v37  ;;  %v487_v41 = vadd.f32 %v486_v26, %v484_v38  ;;  %v407_v49 = vadd.f32 1.0, %v406_v15  ;;  %v519_v51 = vmul.f32 %v518_v33, %v928_v19  ;;  %v529_v44 = vmul.f32 %v528_v34, %v926_v3 }
  0x94   :  { %479 = vst [vmem:[#allocation2 + $0x5] sm:$0x1] %v478_v18  ;;  %v499_v53 = vadd.f32 %v498_v32, %v496_v43  ;;  %v508_v54 = vadd.f32 %v507_v42, %v505_v16  ;;  %v531_v57 = vmul.f32 %v530_v17, %v928_v19  ;;  %v541_v58 = vmul.f32 %v540_v39, %v926_v3 }
  0x95   :  { %v490_v60 = vadd.f32 %v867_v45, %v487_v41  ;;  %v510_v61 = vmul.f32 %v509_v40, %v407_v49  ;;  %v520_v28 = vadd.f32 %v519_v51, %v517_v50  ;;  %v522_v62 = vmul.f32 %v521_v5, %v407_v49 }
  0x96   :  { %v502_v63 = vadd.f32 %v869_v47, %v499_v53  ;;  %v532_v6 = vadd.f32 %v531_v57, %v529_v44  ;;  %v534_v8 = vmul.f32 %v533_v7, %v407_v49  ;;  %v543_v46 = vmul.f32 %v542_v52, %v928_v19 }
  0x97   :  { %491 = vst [vmem:[#allocation2 + $0x6] sm:$0x1] %v490_v60  ;;  %v511_v3 = vadd.f32 %v510_v61, %v508_v54  ;;  %v523_v9 = vadd.f32 %v522_v62, %v520_v28  ;;  %v546_v21 = vmul.f32 %v545_v59, %v407_v49  ;;  %v549_v11 = vmul.f32 %v548_v2, %v837_v31 }
  0x98   :  { %503 = vst [vmem:[#allocation2 + $0x7] sm:$0x1] %v502_v63  ;;  %v535_v10 = vadd.f32 %v534_v8, %v532_v6  ;;  %v544_v45 = vadd.f32 %v543_v46, %v541_v58 }
  0x99   :  { %v514_v47 = vadd.f32 %v880_v48, %v511_v3  ;;  %v526_v12 = vadd.f32 %v883_v55, %v523_v9 }
  0x9a   :  { %v538_v19 = vadd.f32 %v886_v56, %v535_v10  ;;  %v547_v13 = vadd.f32 %v546_v21, %v544_v45 }
  0x9b   :  { %515 = vst [vmem:[#allocation2 + $0x8] sm:$0x1] %v514_v47 }
  0x9c   :  { %527 = vst [vmem:[#allocation2 + $0x9] sm:$0x1] %v526_v12  ;;  %v550_v14 = vadd.f32 %v549_v11, %v547_v13 }
  0x9d   :  { %539 = vst [vmem:[#allocation2 + $0xa] sm:$0x1] %v538_v19 }
  0x9e   :  { %551 = vst [vmem:[#allocation2 + $0xb] sm:$0x1] %v550_v14 }
  0x9f   :  { %572 = dma.vmem_to_hbm [thread:$0]  %s565_s8, 256, %s567_s2, [#allocation3], %s634_s11, %s634_s11, %s635_s12  }
  0xa0   :  { %624 = dma.done.wait [#allocation3], 256  }
  0xa1   :  { %625 = vsyncadd [#allocation3], 4294967040 }
  0xa2   :  { %577 = vsyncpa [#allocation3], 1 }

</bundles_post_ra>
